<compile_context>
chip_gen: v6e
topology: v6e:2x2x1
jax: 0.10.0
libtpu: 0.0.40
codegen_flags: <defaults>
</compile_context>

<pallas_src>
import functools

import jax
import jax.numpy as jnp
from jax.experimental import pallas as pl
from jax.experimental.pallas import tpu as pltpu

TB = 128      # batch-tile (MXU rows per step)
HIDDEN = 128  # fc1/fc2 width
NPAD = 128    # lane-dense padded output width (>= action_dim)


def actor_kernel(x_ref, w1_ref, b1_ref, w2_ref, b2_ref, w3_ref, b3_ref, o_ref):
    # fc1 -> relu   (bf16 operands, f32 accumulation)
    x = x_ref[...]                                          # (TB, state_dim) bf16
    h1 = jnp.dot(x, w1_ref[...], preferred_element_type=jnp.float32) + b1_ref[...]
    h1 = jnp.maximum(h1, 0.0)
    # fc2 -> relu
    h2 = jnp.dot(h1.astype(jnp.bfloat16), w2_ref[...],
                 preferred_element_type=jnp.float32) + b2_ref[...]
    h2 = jnp.maximum(h2, 0.0)
    # fc3 (padded to 128 lanes) -> tanh ; lane-dense (TB, 128) store
    o = jnp.dot(h2.astype(jnp.bfloat16), w3_ref[...],
                preferred_element_type=jnp.float32) + b3_ref[...]
    o_ref[...] = jnp.tanh(o).astype(o_ref.dtype)


@jax.jit
def actor_forward(state, w1, b1, w2, b2, w3, b3):
    """state: (B, state_dim) f32.  w*: (in, out) f32, b*: (1, out) f32.

    Returns (B, action_dim) f32 == tanh(fc3(relu(fc2(relu(fc1(state)))))),
    with matmuls performed in bf16 x bf16 -> f32 on the MXU.
    """
    B, state_dim = state.shape
    action_dim = w3.shape[1]

    # ---- layout prep (cheap, traced once) ----------------------------------
    # Zero-pad fc3 to a lane-dense 128-wide output; padded lanes give tanh(0)=0
    # and are sliced off below.
    w3p = jnp.zeros((HIDDEN, NPAD), jnp.float32).at[:, :action_dim].set(w3)
    b3p = jnp.zeros((1, NPAD), jnp.float32).at[:, :action_dim].set(b3)

    # Pad batch to a multiple of TB so the grid tiles evenly.
    n_tiles = pl.cdiv(B, TB)
    B_pad = n_tiles * TB
    x = jnp.zeros((B_pad, state_dim), jnp.float32).at[:B, :].set(state)

    # bf16 MXU operands, f32 accumulation inside the kernel.
    x_bf = x.astype(jnp.bfloat16)
    w1_bf = w1.astype(jnp.bfloat16)
    w2_bf = w2.astype(jnp.bfloat16)
    w3_bf = w3p.astype(jnp.bfloat16)

    const = lambda i: (0, 0)  # weights/biases: resident across batch tiles
    out_pad = pl.pallas_call(
        actor_kernel,
        out_shape=jax.ShapeDtypeStruct((B_pad, NPAD), jnp.float32),
        grid=(n_tiles,),
        in_specs=[
            pl.BlockSpec((TB, state_dim), lambda i: (i, 0)),   # x tile streams
            pl.BlockSpec((state_dim, HIDDEN), const),          # w1
            pl.BlockSpec((1, HIDDEN), const),                  # b1
            pl.BlockSpec((HIDDEN, HIDDEN), const),             # w2
            pl.BlockSpec((1, HIDDEN), const),                  # b2
            pl.BlockSpec((HIDDEN, NPAD), const),               # w3 (padded)
            pl.BlockSpec((1, NPAD), const),                    # b3 (padded)
        ],
        out_specs=pl.BlockSpec((TB, NPAD), lambda i: (i, 0)),
        compiler_params=pltpu.CompilerParams(
            dimension_semantics=("parallel",)),                # both TCs on v7x
    )(x_bf, w1_bf, b1, w2_bf, b2, w3_bf, b3p)

    return out_pad[:B, :action_dim]


def init_linear_params(key, in_dim, out_dim):
    """PyTorch-like uniform(-1/sqrt(fan_in), 1/sqrt(fan_in)); weight stored (in, out)."""
    kw, kb = jax.random.split(key)
    bound = 1.0 / jnp.sqrt(jnp.float32(in_dim))
    w = jax.random.uniform(kw, (in_dim, out_dim), jnp.float32, -bound, bound)
    b = jax.random.uniform(kb, (1, out_dim), jnp.float32, -bound, bound)
    return w, b


if __name__ == "__main__":
    state_dim = 16
    action_dim = 4
    batch = 8

    key = jax.random.PRNGKey(0)
    k_in, k1, k2, k3 = jax.random.split(key, 4)

    state = jax.random.normal(k_in, (batch, state_dim), jnp.float32)
    w1, b1 = init_linear_params(k1, state_dim, 128)
    w2, b2 = init_linear_params(k2, 128, 128)
    w3, b3 = init_linear_params(k3, 128, action_dim)

    out = actor_forward(state, w1, b1, w2, b2, w3, b3)
    jax.block_until_ready(out)
    assert out.shape == (batch, action_dim)

    # Reference with identical bf16-operand / f32-accumulate numerics.
    xb = state.astype(jnp.bfloat16)
    h1 = jnp.maximum(
        jnp.dot(xb, w1.astype(jnp.bfloat16), preferred_element_type=jnp.float32) + b1, 0.0)
    h2 = jnp.maximum(
        jnp.dot(h1.astype(jnp.bfloat16), w2.astype(jnp.bfloat16),
                preferred_element_type=jnp.float32) + b2, 0.0)
    ref_bf16 = jnp.tanh(
        jnp.dot(h2.astype(jnp.bfloat16), w3.astype(jnp.bfloat16),
                preferred_element_type=jnp.float32) + b3)
    assert jnp.allclose(out, ref_bf16, atol=1e-4, rtol=1e-4)

    # Sanity check against the full-f32 PyTorch-equivalent forward.
    r = jnp.maximum(state @ w1 + b1, 0.0)
    r = jnp.maximum(r @ w2 + b2, 0.0)
    ref_f32 = jnp.tanh(r @ w3 + b3)
    assert jnp.allclose(out, ref_f32, atol=3e-2, rtol=3e-2)

    print("KERNEL_OK")
</pallas_src>

<mosaic_0001>
module attributes {stable_mosaic.version = 11 : i64} {
  func.func @actor_kernel(%arg0: i32, %arg1: memref<128x16xbf16, #tpu.memory_space<vmem>>, %arg2: memref<16x128xbf16, #tpu.memory_space<vmem>>, %arg3: memref<1x128xf32, #tpu.memory_space<vmem>>, %arg4: memref<128x128xbf16, #tpu.memory_space<vmem>>, %arg5: memref<1x128xf32, #tpu.memory_space<vmem>>, %arg6: memref<128x128xbf16, #tpu.memory_space<vmem>>, %arg7: memref<1x128xf32, #tpu.memory_space<vmem>>, %arg8: memref<128x128xf32, #tpu.memory_space<vmem>>) attributes {dimension_semantics = [#tpu.dimension_semantics<parallel>], iteration_bounds = array<i64: 1>, scalar_prefetch = 0 : i64, scratch_operands = 0 : i64, tpu.core_type = #tpu.core_type<tc>, window_params = [{transform_indices = @transform_0, window_bounds = array<i64: 128, 16>}, {pipeline_mode = #tpu.pipeline_mode<synchronous>, transform_indices = @transform_1, window_bounds = array<i64: 16, 128>}, {pipeline_mode = #tpu.pipeline_mode<synchronous>, transform_indices = @transform_2, window_bounds = array<i64: 1, 128>}, {pipeline_mode = #tpu.pipeline_mode<synchronous>, transform_indices = @transform_3, window_bounds = array<i64: 128, 128>}, {pipeline_mode = #tpu.pipeline_mode<synchronous>, transform_indices = @transform_4, window_bounds = array<i64: 1, 128>}, {pipeline_mode = #tpu.pipeline_mode<synchronous>, transform_indices = @transform_5, window_bounds = array<i64: 128, 128>}, {pipeline_mode = #tpu.pipeline_mode<synchronous>, transform_indices = @transform_6, window_bounds = array<i64: 1, 128>}, {transform_indices = @transform_7, window_bounds = array<i64: 128, 128>}]} {
    %c0 = arith.constant 0 : index
    %c0_0 = arith.constant 0 : index
    %0 = vector.load %arg1[%c0, %c0_0] : memref<128x16xbf16, #tpu.memory_space<vmem>>, vector<128x16xbf16>
    %c0_1 = arith.constant 0 : index
    %c0_2 = arith.constant 0 : index
    %1 = vector.load %arg2[%c0_1, %c0_2] : memref<16x128xbf16, #tpu.memory_space<vmem>>, vector<16x128xbf16>
    %cst = arith.constant dense<0.000000e+00> : vector<128x128xf32>
    %2 = tpu.matmul %0, %1, %cst {dimension_numbers = #tpu.dot_dimension_numbers<[1], [0], [0], [1], [0, 0, 1, 1], [], []>} : vector<128x16xbf16>, vector<16x128xbf16>, vector<128x128xf32> -> vector<128x128xf32>
    %c0_3 = arith.constant 0 : index
    %c0_4 = arith.constant 0 : index
    %3 = vector.load %arg3[%c0_3, %c0_4] : memref<1x128xf32, #tpu.memory_space<vmem>>, vector<1x128xf32>
    %4 = vector.broadcast %3 : vector<1x128xf32> to vector<128x128xf32>
    %5 = arith.addf %2, %4 : vector<128x128xf32>
    %cst_5 = arith.constant 0.000000e+00 : f32
    %6 = vector.broadcast %cst_5 : f32 to vector<128x128xf32>
    %7 = arith.maximumf %5, %6 : vector<128x128xf32>
    %8 = arith.truncf %7 : vector<128x128xf32> to vector<128x128xbf16>
    %c0_6 = arith.constant 0 : index
    %c0_7 = arith.constant 0 : index
    %9 = vector.load %arg4[%c0_6, %c0_7] : memref<128x128xbf16, #tpu.memory_space<vmem>>, vector<128x128xbf16>
    %cst_8 = arith.constant dense<0.000000e+00> : vector<128x128xf32>
    %10 = tpu.matmul %8, %9, %cst_8 {dimension_numbers = #tpu.dot_dimension_numbers<[1], [0], [0], [1], [0, 0, 1, 1], [], []>} : vector<128x128xbf16>, vector<128x128xbf16>, vector<128x128xf32> -> vector<128x128xf32>
    %c0_9 = arith.constant 0 : index
    %c0_10 = arith.constant 0 : index
    %11 = vector.load %arg5[%c0_9, %c0_10] : memref<1x128xf32, #tpu.memory_space<vmem>>, vector<1x128xf32>
    %12 = vector.broadcast %11 : vector<1x128xf32> to vector<128x128xf32>
    %13 = arith.addf %10, %12 : vector<128x128xf32>
    %cst_11 = arith.constant 0.000000e+00 : f32
    %14 = vector.broadcast %cst_11 : f32 to vector<128x128xf32>
    %15 = arith.maximumf %13, %14 : vector<128x128xf32>
    %16 = arith.truncf %15 : vector<128x128xf32> to vector<128x128xbf16>
    %c0_12 = arith.constant 0 : index
    %c0_13 = arith.constant 0 : index
    %17 = vector.load %arg6[%c0_12, %c0_13] : memref<128x128xbf16, #tpu.memory_space<vmem>>, vector<128x128xbf16>
    %cst_14 = arith.constant dense<0.000000e+00> : vector<128x128xf32>
    %18 = tpu.matmul %16, %17, %cst_14 {dimension_numbers = #tpu.dot_dimension_numbers<[1], [0], [0], [1], [0, 0, 1, 1], [], []>} : vector<128x128xbf16>, vector<128x128xbf16>, vector<128x128xf32> -> vector<128x128xf32>
    %c0_15 = arith.constant 0 : index
    %c0_16 = arith.constant 0 : index
    %19 = vector.load %arg7[%c0_15, %c0_16] : memref<1x128xf32, #tpu.memory_space<vmem>>, vector<1x128xf32>
    %20 = vector.broadcast %19 : vector<1x128xf32> to vector<128x128xf32>
    %21 = arith.addf %18, %20 : vector<128x128xf32>
    %22 = math.tanh %21 : vector<128x128xf32>
    %c0_17 = arith.constant 0 : index
    %c0_18 = arith.constant 0 : index
    %23 = vector.load %arg8[%c0_17, %c0_18] : memref<128x128xf32, #tpu.memory_space<vmem>>, vector<128x128xf32>
    tpu.vector_store %arg8[%c0_17, %c0_18], %22 {strides = array<i32>} : memref<128x128xf32, #tpu.memory_space<vmem>>, vector<128x128xf32>,
    return
  }
  func.func @transform_0(%arg0: i32) -> (i32, i32) {
    %c0_i32 = arith.constant 0 : i32
    %c0_i32_0 = arith.constant 0 : i32
    return %arg0, %c0_i32 : i32, i32
  }
  func.func @transform_1(%arg0: i32) -> (i32, i32) {
    %c0_i32 = arith.constant 0 : i32
    %c0_i32_0 = arith.constant 0 : i32
    %c0_i32_1 = arith.constant 0 : i32
    return %c0_i32, %c0_i32_0 : i32, i32
  }
  func.func @transform_2(%arg0: i32) -> (i32, i32) {
    %c0_i32 = arith.constant 0 : i32
    %c0_i32_0 = arith.constant 0 : i32
    %c0_i32_1 = arith.constant 0 : i32
    return %c0_i32, %c0_i32_0 : i32, i32
  }
  func.func @transform_3(%arg0: i32) -> (i32, i32) {
    %c0_i32 = arith.constant 0 : i32
    %c0_i32_0 = arith.constant 0 : i32
    %c0_i32_1 = arith.constant 0 : i32
    return %c0_i32, %c0_i32_0 : i32, i32
  }
  func.func @transform_4(%arg0: i32) -> (i32, i32) {
    %c0_i32 = arith.constant 0 : i32
    %c0_i32_0 = arith.constant 0 : i32
    %c0_i32_1 = arith.constant 0 : i32
    return %c0_i32, %c0_i32_0 : i32, i32
  }
  func.func @transform_5(%arg0: i32) -> (i32, i32) {
    %c0_i32 = arith.constant 0 : i32
    %c0_i32_0 = arith.constant 0 : i32
    %c0_i32_1 = arith.constant 0 : i32
    return %c0_i32, %c0_i32_0 : i32, i32
  }
  func.func @transform_6(%arg0: i32) -> (i32, i32) {
    %c0_i32 = arith.constant 0 : i32
    %c0_i32_0 = arith.constant 0 : i32
    %c0_i32_1 = arith.constant 0 : i32
    return %c0_i32, %c0_i32_0 : i32, i32
  }
  func.func @transform_7(%arg0: i32) -> (i32, i32) {
    %c0_i32 = arith.constant 0 : i32
    %c0_i32_0 = arith.constant 0 : i32
    return %arg0, %c0_i32 : i32, i32
  }
}

</mosaic_0001>

<bundles_post_ra>
// kernel: actor_forward.1
= control target key start
LH: loop header
LB: loop body
LE: loop exit
PB: predicated region body
PF: predicated region fallthrough
CT: control target
= control target key end

     0   :  { %vm98_vm0 = vcmask 130048   ;;  %s1054_s1 = inlined_call_operand.vmem [shape: bf16[16,128], index: 1, kind: input, shape index: {}]   ;;  %s1055_s0 = inlined_call_operand.vmem [shape: bf16[128,16], index: 0, kind: input, shape index: {}]   ;;  %s1056_s3 = inlined_call_operand.vmem [shape: bf16[128,128], index: 3, kind: input, shape index: {}]   ;;  %s1057_s5 = inlined_call_operand.vmem [shape: bf16[128,128], index: 5, kind: input, shape index: {}]   ;;  %s1058_s2 = inlined_call_operand.vmem [shape: f32[1,128], index: 2, kind: input, shape index: {}]   ;;  %s1059_s4 = inlined_call_operand.vmem [shape: f32[1,128], index: 4, kind: input, shape index: {}]   ;;  %s1060_s6 = inlined_call_operand.vmem [shape: f32[1,128], index: 6, kind: input, shape index: {}]   ;;  %s1061_s7 = inlined_call_operand.vmem [shape: f32[128,128], index: 7, kind: output, shape index: {}]  }
   0x1   :  { %v799_v0 = vld [vmem:[%s1054_s1] sm:$0xff]   ;;  %v801_v2 = vld [vmem:[%s1055_s0 + $0x8] sm:$0xff]   ;;  %v802_v3 = vld [vmem:[%s1055_s0 + $0x10] sm:$0xff]  }
   0x2   :  { %v800_v1 = vld [vmem:[%s1055_s0] sm:$0xff]   ;;  %717 = vmatprep.subr.bf16.mxu0 %v799_v0  ;;  %v803_v4 = vld [vmem:[%s1055_s0 + $0x18] sm:$0xff]   ;;  %v809_v6 = vld [vmem:[%s1056_s3 + $0x30] sm:$0xff]  }
   0x3   :  { %718 = vmatpush3.bf16.msra.mxu0 %v799_v0  ;;  %719 = vmatprep.mubr.msk.bf16.mxu0 %vm98_vm0, %v800_v1  ;;  %v808_v5 = vld [vmem:[%s1056_s3 + $0x38] sm:$0xff]   ;;  %v804_v7 = vld [vmem:[%s1055_s0 + $0x20] sm:$0xff]   ;;  %v810_v8 = vld [vmem:[%s1056_s3 + $0x28] sm:$0xff]  }
   0x4   :  { %735 = vmatprep.subr.bf16.mxu1 %v808_v5  ;;  %v811_v9 = vld [vmem:[%s1056_s3 + $0x20] sm:$0xff]   ;;  %v805_v10 = vld [vmem:[%s1055_s0 + $0x28] sm:$0xff]   ;;  %v806_v11 = vld [vmem:[%s1055_s0 + $0x30] sm:$0xff]  }
   0x5   :  { %736 = vmatpush3.bf16.msra.mxu1 %v808_v5  ;;  %v812_v12 = vld [vmem:[%s1056_s3 + $0x18] sm:$0xff]   ;;  %v813_v14 = vld [vmem:[%s1056_s3 + $0x10] sm:$0xff]   ;;  %v814_v15 = vld [vmem:[%s1056_s3 + $0x8] sm:$0xff]  }
   0x6   :  { %720 = vmatmul.mubr.msk.bf16.vlgmr.msra.gmra.mxu0 %vm98_vm0, %v801_v2  ;;  %737 = vmatprep.subr.bf16.mxu1 %v809_v6  ;;  %v807_v13 = vld [vmem:[%s1055_s0 + $0x38] sm:$0xff]   ;;  %v815_v16 = vld [vmem:[%s1056_s3] sm:$0xff]   ;;  %v817_v18 = vld [vmem:[%s1057_s5 + $0x30] sm:$0xff]  }
   0x7   :  { %723 = vmatprep.mubr.msk.bf16.mxu0 %vm98_vm0, %v802_v3  ;;  %v816_v17 = vld [vmem:[%s1057_s5 + $0x38] sm:$0xff]   ;;  %v818_v19 = vld [vmem:[%s1057_s5 + $0x28] sm:$0xff]   ;;  %v819_v20 = vld [vmem:[%s1057_s5 + $0x20] sm:$0xff]  }
   0x8   :  { %767 = vmatprep.subr.bf16.mxu0 %v816_v17  ;;  %v820_v21 = vld [vmem:[%s1057_s5 + $0x18] sm:$0xff]   ;;  %v640_v24 = vld [vmem:[%s1058_s2] ss:$0 sm:$0xff] }
   0x9   :  { %738 = vmatpush3.bf16.msra.mxu1 %v809_v6  ;;  %768 = vmatpush3.bf16.msra.mxu0 %v816_v17  ;;  %v823_v17 = vld [vmem:[%s1057_s5] sm:$0xff]  }
   0xa   :  { %739 = vmatprep.subr.bf16.mxu1 %v810_v8  ;;  %769 = vmatprep.subr.bf16.mxu0 %v817_v18 }
   0xd   :  { %740 = vmatpush3.bf16.msra.mxu1 %v810_v8  ;;  %770 = vmatpush3.bf16.msra.mxu0 %v817_v18 }
   0xe   :  { %724 = vmatmul.mubr.msk.bf16.gmra.mxu0 %vm98_vm0, %v803_v4  ;;  %741 = vmatprep.subr.bf16.mxu1 %v811_v9 }
   0xf   :  { %727 = vmatprep.mubr.msk.bf16.mxu0 %vm98_vm0, %v804_v7  ;;  %771 = vmatprep.subr.bf16.mxu0 %v818_v19 }
  0x11   :  { %742 = vmatpush3.bf16.msra.mxu1 %v811_v9  ;;  %772 = vmatpush3.bf16.msra.mxu0 %v818_v19 }
  0x12   :  { %743 = vmatprep.subr.bf16.mxu1 %v812_v12  ;;  %773 = vmatprep.subr.bf16.mxu0 %v819_v20 }
  0x15   :  { %744 = vmatpush3.bf16.msra.mxu1 %v812_v12  ;;  %774 = vmatpush3.bf16.msra.mxu0 %v819_v20  ;;  %v658_v20 = vld [vmem:[%s1059_s4] ss:$0 sm:$0xff] }
  0x16   :  { %728 = vmatmul.mubr.msk.bf16.gmra.mxu0 %vm98_vm0, %v805_v10  ;;  %745 = vmatprep.subr.bf16.mxu1 %v813_v14 }
  0x17   :  { %731 = vmatprep.mubr.msk.bf16.mxu0 %vm98_vm0, %v806_v11  ;;  %775 = vmatprep.subr.bf16.mxu0 %v820_v21 }
  0x19   :  { %746 = vmatpush3.bf16.msra.mxu1 %v813_v14  ;;  %776 = vmatpush3.bf16.msra.mxu0 %v820_v21 }
  0x1a   :  { %747 = vmatprep.subr.bf16.mxu1 %v814_v15 }
  0x1d   :  { %748 = vmatpush3.bf16.msra.mxu1 %v814_v15  ;;  %v821_v15 = vld [vmem:[%s1057_s5 + $0x10] sm:$0xff]  }
  0x1e   :  { %732 = vmatmul.mubr.msk.bf16.gmra.mxu0 %vm98_vm0, %v807_v13  ;;  %749 = vmatprep.subr.bf16.mxu1 %v815_v16 }
  0x1f   :  { %777 = vmatprep.subr.bf16.mxu0 %v821_v15 }
  0x20   :  { %778 = vmatpush3.bf16.msra.mxu0 %v821_v15 }
  0x21   :  { %750 = vmatpush3.bf16.msra.mxu1 %v815_v16  ;;  %v822_v16 = vld [vmem:[%s1057_s5 + $0x8] sm:$0xff]  }
  0x22   :  { %779 = vmatprep.subr.bf16.mxu0 %v822_v16 }
  0x24   :  { %780 = vmatpush3.bf16.msra.mxu0 %v822_v16 }
  0x25   :  { %781 = vmatprep.subr.bf16.mxu0 %v823_v17 }
  0x28   :  { %782 = vmatpush3.bf16.msra.mxu0 %v823_v17 }
  0xc6   :  { %v721_v22 = vpop.f32.mrf.mxu0 }
  0xc7   :  { %v166_v28 = vadd.f32 %v721_v22, %v640_v24 }
  0xc8   :  { %v157_v23 = vpop.f32.mrf.mxu0 }
  0xc9   :  { %v158_v26 = vadd.f32 %v640_v24, %v157_v23  ;;  %v222_v35 = vmax.f32 %v166_v28, 0.0 }
  0xca   :  { %v722_v25 = vpop.f32.mrf.mxu0 }
  0xcb   :  { %v169_v27 = vadd.f32 %v722_v25, %v640_v24  ;;  %v220_v33 = vmax.f32 %v158_v26, 0.0 }
  0xcc   :  { %v160_v29 = vpop.f32.mrf.mxu0 }
  0xcd   :  { %v161_v30 = vadd.f32 %v640_v24, %v160_v29  ;;  %v223_v31 = vmax.f32 %v169_v27, 0.0 }
  0xce   :  { %v725_v32 = vpop.f32.mrf.mxu0 }
  0xcf   :  { %v221_v34 = vmax.f32 %v161_v30, 0.0  ;;  %v237_v38 = vpack.c.bf16 %v223_v31, %v222_v35  ;;  %v182_v42 = vadd.f32 %v725_v32, %v640_v24 }
  0xd0   :  { %v173_v36 = vpop.f32.mrf.mxu0 }
  0xd1   :  { %v236_v37 = vpack.c.bf16 %v221_v34, %v220_v33  ;;  %v174_v40 = vadd.f32 %v640_v24, %v173_v36  ;;  %v226_v49 = vmax.f32 %v182_v42, 0.0 }
  0xd2   :  { %v726_v39 = vpop.f32.mrf.mxu0 }
  0xd3   :  { %v185_v41 = vadd.f32 %v726_v39, %v640_v24  ;;  %751 = vmatprep.mubr.bf16.mxu1 %v236_v37  ;;  %v224_v47 = vmax.f32 %v174_v40, 0.0 }
  0xd4   :  { %v176_v43 = vpop.f32.mrf.mxu0  ;;  %752 = vmatmul.mubr.bf16.vlgmr.msra.gmra.mxu1 %v237_v38 }
  0xd5   :  { %v177_v44 = vadd.f32 %v640_v24, %v176_v43  ;;  %v227_v45 = vmax.f32 %v185_v41, 0.0 }
  0xd6   :  { %v729_v46 = vpop.f32.mrf.mxu0 }
  0xd7   :  { %v225_v48 = vmax.f32 %v177_v44, 0.0  ;;  %v239_v52 = vpack.c.bf16 %v227_v45, %v226_v49  ;;  %v198_v56 = vadd.f32 %v729_v46, %v640_v24 }
  0xd8   :  { %v189_v50 = vpop.f32.mrf.mxu0 }
  0xd9   :  { %v238_v51 = vpack.c.bf16 %v225_v48, %v224_v47  ;;  %v190_v54 = vadd.f32 %v640_v24, %v189_v50  ;;  %v230_v63 = vmax.f32 %v198_v56, 0.0 }
  0xda   :  { %v730_v53 = vpop.f32.mrf.mxu0 }
  0xdb   :  { %v201_v55 = vadd.f32 %v730_v53, %v640_v24  ;;  %755 = vmatprep.mubr.bf16.mxu1 %v238_v51  ;;  %v228_v61 = vmax.f32 %v190_v54, 0.0 }
  0xdc   :  { %v192_v57 = vpop.f32.mrf.mxu0  ;;  %756 = vmatmul.mubr.bf16.gmra.mxu1 %v239_v52 }
  0xdd   :  { %v193_v58 = vadd.f32 %v640_v24, %v192_v57  ;;  %v231_v59 = vmax.f32 %v201_v55, 0.0 }
  0xde   :  { %v733_v60 = vpop.f32.mrf.mxu0 }
  0xdf   :  { %v229_v62 = vmax.f32 %v193_v58, 0.0  ;;  %v241_v2 = vpack.c.bf16 %v231_v59, %v230_v63  ;;  %v214_v6 = vadd.f32 %v733_v60, %v640_v24 }
  0xe0   :  { %v205_v0 = vpop.f32.mrf.mxu0 }
  0xe1   :  { %v240_v1 = vpack.c.bf16 %v229_v62, %v228_v61  ;;  %v206_v4 = vadd.f32 %v640_v24, %v205_v0  ;;  %v234_v12 = vmax.f32 %v214_v6, 0.0 }
  0xe2   :  { %v734_v3 = vpop.f32.mrf.mxu0 }
  0xe3   :  { %v217_v5 = vadd.f32 %v734_v3, %v640_v24  ;;  %759 = vmatprep.mubr.bf16.mxu1 %v240_v1  ;;  %v232_v10 = vmax.f32 %v206_v4, 0.0 }
  0xe4   :  { %v208_v7 = vpop.f32.mrf.mxu0  ;;  %760 = vmatmul.mubr.bf16.gmra.mxu1 %v241_v2 }
  0xe5   :  { %v209_v8 = vadd.f32 %v640_v24, %v208_v7  ;;  %v235_v9 = vmax.f32 %v217_v5, 0.0 }
  0xe7   :  { %v233_v11 = vmax.f32 %v209_v8, 0.0  ;;  %v243_v14 = vpack.c.bf16 %v235_v9, %v234_v12 }
  0xe9   :  { %v242_v13 = vpack.c.bf16 %v233_v11, %v232_v10  ;;  %v988_v11 = vld [vmem:[%s1060_s6] ss:$0 sm:$0xff] }
  0xeb   :  { %763 = vmatprep.mubr.bf16.mxu1 %v242_v13 }
  0xec   :  { %764 = vmatmul.mubr.bf16.gmra.mxu1 %v243_v14 }
 0x194   :  { %v753_v18 = vpop.f32.mrf.mxu1 }
 0x195   :  { %v358_v24 = vadd.f32 %v753_v18, %v658_v20 }
 0x196   :  { %v349_v19 = vpop.f32.mrf.mxu1 }
 0x197   :  { %v350_v22 = vadd.f32 %v658_v20, %v349_v19  ;;  %v414_v31 = vmax.f32 %v358_v24, 0.0 }
 0x198   :  { %v754_v21 = vpop.f32.mrf.mxu1 }
 0x199   :  { %v361_v23 = vadd.f32 %v754_v21, %v658_v20  ;;  %v412_v29 = vmax.f32 %v350_v22, 0.0 }
 0x19a   :  { %v352_v25 = vpop.f32.mrf.mxu1 }
 0x19b   :  { %v353_v26 = vadd.f32 %v658_v20, %v352_v25  ;;  %v415_v27 = vmax.f32 %v361_v23, 0.0 }
 0x19c   :  { %v757_v28 = vpop.f32.mrf.mxu1 }
 0x19d   :  { %v413_v30 = vmax.f32 %v353_v26, 0.0  ;;  %v429_v34 = vpack.c.bf16 %v415_v27, %v414_v31  ;;  %v374_v38 = vadd.f32 %v757_v28, %v658_v20 }
 0x19e   :  { %v365_v32 = vpop.f32.mrf.mxu1 }
 0x19f   :  { %v428_v33 = vpack.c.bf16 %v413_v30, %v412_v29  ;;  %v366_v36 = vadd.f32 %v658_v20, %v365_v32  ;;  %v418_v45 = vmax.f32 %v374_v38, 0.0 }
 0x1a0   :  { %v758_v35 = vpop.f32.mrf.mxu1 }
 0x1a1   :  { %v377_v37 = vadd.f32 %v758_v35, %v658_v20  ;;  %783 = vmatprep.mubr.bf16.mxu0 %v428_v33  ;;  %v416_v43 = vmax.f32 %v366_v36, 0.0 }
 0x1a2   :  { %v368_v39 = vpop.f32.mrf.mxu1  ;;  %784 = vmatmul.mubr.bf16.vlgmr.msra.gmra.mxu0 %v429_v34 }
 0x1a3   :  { %v369_v40 = vadd.f32 %v658_v20, %v368_v39  ;;  %v419_v41 = vmax.f32 %v377_v37, 0.0 }
 0x1a4   :  { %v761_v42 = vpop.f32.mrf.mxu1 }
 0x1a5   :  { %v417_v44 = vmax.f32 %v369_v40, 0.0  ;;  %v431_v48 = vpack.c.bf16 %v419_v41, %v418_v45  ;;  %v390_v52 = vadd.f32 %v761_v42, %v658_v20 }
 0x1a6   :  { %v381_v46 = vpop.f32.mrf.mxu1 }
 0x1a7   :  { %v430_v47 = vpack.c.bf16 %v417_v44, %v416_v43  ;;  %v382_v50 = vadd.f32 %v658_v20, %v381_v46  ;;  %v422_v59 = vmax.f32 %v390_v52, 0.0 }
 0x1a8   :  { %v762_v49 = vpop.f32.mrf.mxu1 }
 0x1a9   :  { %v393_v51 = vadd.f32 %v762_v49, %v658_v20  ;;  %787 = vmatprep.mubr.bf16.mxu0 %v430_v47  ;;  %v420_v57 = vmax.f32 %v382_v50, 0.0 }
 0x1aa   :  { %v384_v53 = vpop.f32.mrf.mxu1  ;;  %788 = vmatmul.mubr.bf16.gmra.mxu0 %v431_v48 }
 0x1ab   :  { %v385_v54 = vadd.f32 %v658_v20, %v384_v53  ;;  %v423_v55 = vmax.f32 %v393_v51, 0.0 }
 0x1ac   :  { %v765_v56 = vpop.f32.mrf.mxu1 }
 0x1ad   :  { %v421_v58 = vmax.f32 %v385_v54, 0.0  ;;  %v433_v62 = vpack.c.bf16 %v423_v55, %v422_v59  ;;  %v406_v2 = vadd.f32 %v765_v56, %v658_v20 }
 0x1ae   :  { %v397_v60 = vpop.f32.mrf.mxu1 }
 0x1af   :  { %v432_v61 = vpack.c.bf16 %v421_v58, %v420_v57  ;;  %v398_v0 = vadd.f32 %v658_v20, %v397_v60  ;;  %v426_v8 = vmax.f32 %v406_v2, 0.0 }
 0x1b0   :  { %v766_v63 = vpop.f32.mrf.mxu1 }
 0x1b1   :  { %v409_v1 = vadd.f32 %v766_v63, %v658_v20  ;;  %791 = vmatprep.mubr.bf16.mxu0 %v432_v61  ;;  %v424_v6 = vmax.f32 %v398_v0, 0.0 }
 0x1b2   :  { %v400_v3 = vpop.f32.mrf.mxu1  ;;  %792 = vmatmul.mubr.bf16.gmra.mxu0 %v433_v62 }
 0x1b3   :  { %v401_v4 = vadd.f32 %v658_v20, %v400_v3  ;;  %v427_v5 = vmax.f32 %v409_v1, 0.0 }
 0x1b5   :  { %v425_v7 = vmax.f32 %v401_v4, 0.0  ;;  %v435_v10 = vpack.c.bf16 %v427_v5, %v426_v8 }
 0x1b7   :  { %v434_v9 = vpack.c.bf16 %v425_v7, %v424_v6 }
 0x1b9   :  { %795 = vmatprep.mubr.bf16.mxu0 %v434_v9 }
 0x1ba   :  { %796 = vmatmul.mubr.bf16.gmra.mxu0 %v435_v10 }
 0x262   :  { %v785_v12 = vpop.f32.mrf.mxu0 }
 0x263   :  { %v550_v13 = vadd.f32 %v785_v12, %v988_v11 }
 0x264   :  { %v541_v14 = vpop.f32.mrf.mxu0 }
 0x265   :  { %824 = vtanh.f32 %v550_v13  ;;  %v542_v15 = vadd.f32 %v988_v11, %v541_v14 }
 0x266   :  { %v786_v16 = vpop.f32.mrf.mxu0 }
 0x267   :  { %826 = vtanh.f32 %v542_v15  ;;  %v553_v17 = vadd.f32 %v786_v16, %v988_v11 }
 0x268   :  { %v544_v18 = vpop.f32.mrf.mxu0 }
 0x269   :  { %828 = vtanh.f32 %v553_v17  ;;  %v545_v19 = vadd.f32 %v988_v11, %v544_v18 }
 0x26a   :  { %v789_v20 = vpop.f32.mrf.mxu0 }
 0x26b   :  { %830 = vtanh.f32 %v545_v19  ;;  %v566_v21 = vadd.f32 %v789_v20, %v988_v11 }
 0x26c   :  { %v557_v22 = vpop.f32.mrf.mxu0 }
 0x26d   :  { %832 = vtanh.f32 %v566_v21  ;;  %v558_v23 = vadd.f32 %v988_v11, %v557_v22 }
 0x26e   :  { %v790_v24 = vpop.f32.mrf.mxu0 }
 0x26f   :  { %834 = vtanh.f32 %v558_v23  ;;  %v569_v25 = vadd.f32 %v790_v24, %v988_v11 }
 0x270   :  { %v560_v26 = vpop.f32.mrf.mxu0 }
 0x271   :  { %836 = vtanh.f32 %v569_v25  ;;  %v561_v27 = vadd.f32 %v988_v11, %v560_v26 }
 0x272   :  { %v825_v28 = vpop.eup %824  ;;  %v793_v29 = vpop.f32.mrf.mxu0 }
 0x273   :  { %622 = vst [vmem:[%s1061_s7 + $0x10] sm:$0xff] %v825_v28  ;;  %838 = vtanh.f32 %v561_v27  ;;  %v582_v30 = vadd.f32 %v793_v29, %v988_v11 }
 0x274   :  { %v827_v31 = vpop.eup %826  ;;  %v573_v32 = vpop.f32.mrf.mxu0 }
 0x275   :  { %620 = vst [vmem:[%s1061_s7] sm:$0xff] %v827_v31  ;;  %840 = vtanh.f32 %v582_v30  ;;  %v574_v33 = vadd.f32 %v988_v11, %v573_v32 }
 0x276   :  { %v829_v34 = vpop.eup %828  ;;  %v794_v35 = vpop.f32.mrf.mxu0 }
 0x277   :  { %623 = vst [vmem:[%s1061_s7 + $0x18] sm:$0xff] %v829_v34  ;;  %842 = vtanh.f32 %v574_v33  ;;  %v585_v36 = vadd.f32 %v794_v35, %v988_v11 }
 0x278   :  { %v831_v37 = vpop.eup %830  ;;  %v576_v38 = vpop.f32.mrf.mxu0 }
 0x279   :  { %621 = vst [vmem:[%s1061_s7 + $0x8] sm:$0xff] %v831_v37  ;;  %844 = vtanh.f32 %v585_v36  ;;  %v577_v39 = vadd.f32 %v988_v11, %v576_v38 }
 0x27a   :  { %v833_v40 = vpop.eup %832  ;;  %v797_v41 = vpop.f32.mrf.mxu0 }
 0x27b   :  { %626 = vst [vmem:[%s1061_s7 + $0x30] sm:$0xff] %v833_v40  ;;  %846 = vtanh.f32 %v577_v39  ;;  %v598_v42 = vadd.f32 %v797_v41, %v988_v11 }
 0x27c   :  { %v835_v43 = vpop.eup %834  ;;  %v589_v44 = vpop.f32.mrf.mxu0 }
 0x27d   :  { %624 = vst [vmem:[%s1061_s7 + $0x20] sm:$0xff] %v835_v43  ;;  %848 = vtanh.f32 %v598_v42  ;;  %v590_v45 = vadd.f32 %v988_v11, %v589_v44 }
 0x27e   :  { %v837_v46 = vpop.eup %836  ;;  %v798_v47 = vpop.f32.mrf.mxu0 }
 0x27f   :  { %627 = vst [vmem:[%s1061_s7 + $0x38] sm:$0xff] %v837_v46  ;;  %850 = vtanh.f32 %v590_v45  ;;  %v601_v48 = vadd.f32 %v798_v47, %v988_v11 }
 0x280   :  { %v839_v49 = vpop.eup %838  ;;  %v592_v50 = vpop.f32.mrf.mxu0 }
 0x281   :  { %625 = vst [vmem:[%s1061_s7 + $0x28] sm:$0xff] %v839_v49  ;;  %852 = vtanh.f32 %v601_v48  ;;  %v593_v51 = vadd.f32 %v988_v11, %v592_v50 }
 0x282   :  { %v841_v52 = vpop.eup %840 }
 0x283   :  { %630 = vst [vmem:[%s1061_s7 + $0x50] sm:$0xff] %v841_v52  ;;  %854 = vtanh.f32 %v593_v51 }
 0x284   :  { %v843_v53 = vpop.eup %842 }
 0x285   :  { %628 = vst [vmem:[%s1061_s7 + $0x40] sm:$0xff] %v843_v53 }
 0x286   :  { %v845_v54 = vpop.eup %844 }
 0x287   :  { %631 = vst [vmem:[%s1061_s7 + $0x58] sm:$0xff] %v845_v54 }
 0x288   :  { %v847_v55 = vpop.eup %846 }
 0x289   :  { %629 = vst [vmem:[%s1061_s7 + $0x48] sm:$0xff] %v847_v55 }
 0x28a   :  { %v849_v56 = vpop.eup %848 }
 0x28b   :  { %634 = vst [vmem:[%s1061_s7 + $0x70] sm:$0xff] %v849_v56 }
 0x28c   :  { %v851_v57 = vpop.eup %850 }
 0x28d   :  { %632 = vst [vmem:[%s1061_s7 + $0x60] sm:$0xff] %v851_v57 }
 0x28e   :  { %v853_v58 = vpop.eup %852 }
 0x28f   :  { %635 = vst [vmem:[%s1061_s7 + $0x78] sm:$0xff] %v853_v58 }
 0x290   :  { %v855_v59 = vpop.eup %854 }
 0x291   :  { %633 = vst [vmem:[%s1061_s7 + $0x68] sm:$0xff] %v855_v59 }

</bundles_post_ra>
